<compile_context>
chip_gen: v7x
topology: tpu7x:2x2x1
jax: 0.10.0
libtpu: 0.0.40
codegen_flags: <defaults>
</compile_context>

<pallas_src>
import jax
import jax.numpy as jnp
import numpy as np
from jax.experimental import pallas as pl
from jax.experimental.pallas import tpu as pltpu


# -----------------------------------------------------------------------------
# Constant-slab layout (shared by pack_params and the kernel).
# Row starts are multiples of 8 so every in-kernel slice is sublane-aligned.
# -----------------------------------------------------------------------------
def _layout(B, N, F):
    BN = B * N
    row_rslab = 2 * F                         # bias / rowsum row
    row_P = -(-(row_rslab + 1) // 8) * 8      # per-batch node-sum selector (B, BN)
    row_oh = -(-(row_P + B) // 8) * 8         # batch one-hot expander (BN, B)
    rows = row_oh + BN
    cols = 13 * F + 1
    return row_rslab, row_P, row_oh, rows, cols


# -----------------------------------------------------------------------------
# Host-side, one-time weight packing (hoisted out of the per-call jit).
# -----------------------------------------------------------------------------
def pack_params(params, B, N):
    f32 = np.float32
    p = {k: np.asarray(v, f32) for k, v in params.items()}
    F = p["Win"].shape[0]
    G = p["Wi_n"].shape[0] - F
    BN = B * N
    row_rslab, row_P, row_oh, rows, cols = _layout(B, N, F)

    # Win/Wout merged; the even/odd column permutation that implements
    # torch's cat(Hin,Hout).view(...,F,2).max(-1) is folded into the weights,
    # packed as one (2F, 4F) block-diagonal so [Sr|Ss] @ weo_bd = [tin|tout].
    Win_full = np.concatenate([p["Win"], np.zeros((F, F), f32)], axis=1)    # (F,2F)
    Wout_full = np.concatenate([np.zeros((F, F), f32), p["Wout"]], axis=1)  # (F,2F)
    bcat = np.concatenate([p["bin"], p["bout"]])                            # (2F,)
    ev, od = np.arange(0, 2 * F, 2), np.arange(1, 2 * F, 2)
    win_eo = np.concatenate([Win_full[:, ev], Win_full[:, od]], axis=1)
    wout_eo = np.concatenate([Wout_full[:, ev], Wout_full[:, od]], axis=1)
    b_eo = np.concatenate([bcat[ev], bcat[od]])
    weo_bd = np.zeros((2 * F, 4 * F), f32)
    weo_bd[:F, :2 * F] = win_eo
    weo_bd[F:, 2 * F:] = wout_eo

    # Fused LSTM gate weights (I,F,O,C).  NOTE: bf_n is reused as the input-
    # gate bias, mirroring the torch code (pinned by the reference check).
    w4 = np.concatenate([p["Wi_n"][G:], p["Wf_n"][G:],
                         p["Wo_n"][G:], p["Wc_n"][G:]], axis=1)             # (F,4F)
    u4 = np.concatenate([p["Ui_n"], p["Uf_n"], p["Uo_n"],
                         np.zeros((F, F), f32)], axis=1)                    # (F,4F)
    # g_ @ W*[:G] == cur_a * rowsum(W*[:G]) -- valid only because g_ replicates
    # cur_a identically across all G graph columns.
    w4top = np.concatenate([p["Wi_n"][:G].sum(0), p["Wf_n"][:G].sum(0),
                            p["Wo_n"][:G].sum(0), p["Wc_n"][:G].sum(0)])    # (4F,)
    b4 = np.concatenate([p["bf_n"], p["bf_n"], p["bo_n"], p["bc_n"]])       # (4F,)

    onehot = (np.repeat(np.arange(B), N)[:, None]
              == np.arange(B)[None, :]).astype(f32)                         # (BN,B)

    cslab = np.zeros((rows, cols), f32)
    cslab[0:F, 0:4 * F] = w4
    cslab[0:F, 4 * F:8 * F] = u4
    cslab[0:2 * F, 8 * F:12 * F] = weo_bd
    cslab[0:F, 12 * F:13 * F] = p["Uc_n"]
    cslab[0:F, 13 * F:13 * F + 1] = p["Wa"] / N     # fold the node-mean 1/N into Wa
    cslab[row_rslab, 0:2 * F] = b_eo
    cslab[row_rslab, 4 * F:8 * F] = b4
    cslab[row_rslab, 8 * F:12 * F] = w4top
    cslab[row_P:row_P + B, 0:BN] = onehot.T
    cslab[row_oh:row_oh + BN, 0:B] = onehot
    return jnp.asarray(cslab)


# -----------------------------------------------------------------------------
# Kernel: one chained cell step per grid point (s, t), state carried in scratch.
# -----------------------------------------------------------------------------
def make_kernel(B, N, F):
    BN = B * N
    f32 = jnp.float32
    row_rslab, row_P, row_oh, _, _ = _layout(B, N, F)

    def kernel(cslab_ref, sr_ref, init_ref, out_ref, e_scr, m_scr):
        t = pl.program_id(1)                        # step axis ("arbitrary")

        # Step 0 of every sequence: load the initial state into the carry.
        @pl.when(t == 0)
        def _():
            e_scr[...] = init_ref[0, :, 0:F]
            m_scr[...] = init_ref[0, :, F:2 * F]

        E = e_scr[...]                              # (BN, F) prev node embedding
        Mem = m_scr[...]                            # (BN, F) prev node memory

        sr = sr_ref[0, 0]                           # (BN, 2) [send | recv]
        send_col = sr[:, 0:1]
        recv_col = sr[:, 1:2]

        # ---- resident constants (single stream, DMA'd once) -----------------
        w4 = cslab_ref[0:F, 0:4 * F]                # (F,4F)  [Wi|Wf|Wo|Wc] node rows
        u4 = cslab_ref[0:F, 4 * F:8 * F]            # (F,4F)  [Ui|Uf|Uo|0]
        weo = cslab_ref[0:2 * F, 8 * F:12 * F]      # (2F,4F) blockdiag(win_eo, wout_eo)
        uc = cslab_ref[0:F, 12 * F:13 * F]          # (F,F)   Uc
        wa = cslab_ref[0:F, 13 * F:13 * F + 1]      # (F,1)   Wa / N
        b_eo = cslab_ref[row_rslab:row_rslab + 1, 0:2 * F]        # (1,2F)
        b4 = cslab_ref[row_rslab:row_rslab + 1, 4 * F:8 * F]      # (1,4F)
        w4top = cslab_ref[row_rslab:row_rslab + 1, 8 * F:12 * F]  # (1,4F)
        P = cslab_ref[row_P:row_P + B, 0:BN]        # (B,BN)  per-batch sum selector
        oh = cslab_ref[row_oh:row_oh + BN, 0:B]     # (BN,B)  batch one-hot expander

        # ---- MessagePassing (rank-1 per batch; 3 fused tiny dots) -----------
        rs_cat = jnp.concatenate([recv_col * E, send_col * E], axis=1)     # (BN,2F)
        srss = jnp.dot(P, rs_cat, preferred_element_type=f32)              # (B,2F) [Sr|Ss]
        tio = jnp.dot(srss, weo, preferred_element_type=f32)               # (B,4F) [tin|tout]
        tio_n = jnp.dot(oh, tio, preferred_element_type=f32)               # (BN,4F)
        pre2 = (send_col * tio_n[:, 0:2 * F]
                + recv_col * tio_n[:, 2 * F:4 * F] + b_eo)                 # (BN,2F)
        ht = jnp.tanh(pre2)
        H = jnp.maximum(ht[:, 0:F], ht[:, F:2 * F])                        # (BN,F)

        # ---- TemporalModeling: attention scalar -----------------------------
        hsum = jnp.dot(P, H, preferred_element_type=f32)                   # (B,F)
        cur_a = jnp.dot(hsum, wa, preferred_element_type=f32)              # (B,1)
        gterm = jnp.dot(oh, cur_a * w4top, preferred_element_type=f32)     # (BN,4F)

        # ---- fused node-LSTM gates (bf_n reused as input-gate bias) ---------
        pre4 = (jnp.dot(H, w4, preferred_element_type=f32)
                + jnp.dot(E, u4, preferred_element_type=f32)
                + gterm + b4)                                              # (BN,4F)
        ig = jax.nn.sigmoid(pre4[:, 0:F])
        fg = jax.nn.sigmoid(pre4[:, F:2 * F])
        og = jax.nn.sigmoid(pre4[:, 2 * F:3 * F])
        c_ = jnp.tanh(pre4[:, 3 * F:4 * F]
                      + jnp.dot(fg * E, uc, preferred_element_type=f32))
        ct = fg * Mem + ig * c_
        emb = og * jnp.tanh(ct)                                            # (BN,F)

        # ---- single output stream + state carry -----------------------------
        out_ref[0, 0, 0:BN, :] = emb
        out_ref[0, 0, BN:BN + B, 0:1] = cur_a
        e_scr[...] = emb
        m_scr[...] = ct

    return kernel


# -----------------------------------------------------------------------------
# Fused wrapper: S independent sequences x T chained steps in ONE pallas_call.
# -----------------------------------------------------------------------------
@jax.jit
def evo_lstm_seq_pallas(send_seq, recv_seq, init_emb, init_mem, cslab):
    f32 = jnp.float32
    S, T, B, N = send_seq.shape
    BN = B * N
    F = init_emb.shape[-1]

    srslab = jnp.stack([send_seq.reshape(S, T, BN),
                        recv_seq.reshape(S, T, BN)], axis=-1).astype(f32)      # (S,T,BN,2)
    init0 = jnp.concatenate([init_emb.reshape(S, BN, F),
                             init_mem.reshape(S, BN, F)], axis=-1).astype(f32)  # (S,BN,2F)

    out = pl.pallas_call(
        make_kernel(B, N, F),
        grid=(S, T),
        in_specs=[
            pl.BlockSpec(cslab.shape, lambda s, t: (0, 0)),          # resident weights
            pl.BlockSpec((1, 1, BN, 2), lambda s, t: (s, t, 0, 0)),  # per-step send/recv
            pl.BlockSpec((1, BN, 2 * F), lambda s, t: (s, 0, 0)),    # per-seq initial state
        ],
        out_specs=pl.BlockSpec((1, 1, BN + B, F), lambda s, t: (s, t, 0, 0)),
        out_shape=jax.ShapeDtypeStruct((S, T, BN + B, F), f32),
        scratch_shapes=[pltpu.VMEM((BN, F), f32),    # carried node embedding
                        pltpu.VMEM((BN, F), f32)],   # carried node memory
        compiler_params=pltpu.CompilerParams(
            dimension_semantics=("parallel", "arbitrary")),
    )(cslab, srslab, init0)

    emb_seq = out[:, :, :BN, :]                      # (S,T,BN,F)
    a_seq = out[:, :, BN:BN + B, 0:1]                # (S,T,B,1)
    return emb_seq, a_seq


def evo_lstm_cell_pallas(send, recv, prev_emb, prev_mem, cslab):
    """Single cell step, exactly the torch forward (returns (B*N,F), (B,1))."""
    emb, a = evo_lstm_seq_pallas(send[None, None], recv[None, None],
                                 prev_emb[None], prev_mem[None], cslab)
    return emb[0, 0], a[0, 0]


# -----------------------------------------------------------------------------
# Deterministic parameters (torch __init__ with is_training=True)
# -----------------------------------------------------------------------------
def make_params(F, G):
    w = lambda i, o: jnp.full((i, o), 0.1, jnp.float32)   # randn*0 + 0.1
    b = lambda o: jnp.ones((o,), jnp.float32)
    return {
        "Win": w(F, F), "bin": b(F), "Wout": w(F, F), "bout": b(F),
        "Wa": w(F, 1),
        "Wi_n": w(F + G, F), "Ui_n": w(F, F), "bi_n": b(F),
        "Wf_n": w(F + G, F), "Uf_n": w(F, F), "bf_n": b(F),
        "Wo_n": w(F + G, F), "Uo_n": w(F, F), "bo_n": b(F),
        "Wc_n": w(F + G, F), "Uc_n": w(F, F), "bc_n": b(F),
    }


# -----------------------------------------------------------------------------
# Pure-JAX reference for one cell step (mirrors the torch forward).
# -----------------------------------------------------------------------------
def reference_step(send, recv, prev_emb, prev_mem, p):
    B, N = send.shape
    F = p["Win"].shape[0]
    G = p["Wi_n"].shape[0] - F
    Min = send[:, :, None] * recv[:, None, :]
    Mout = recv[:, :, None] * send[:, None, :]
    Hin_ = jnp.einsum("bij,bjf->bif", Min, prev_emb).reshape(-1, F)
    Hin = jnp.tanh(Hin_ @ p["Win"] + p["bin"])
    Hout_ = jnp.einsum("bij,bjf->bif", Mout, prev_emb).reshape(-1, F)
    Hout = jnp.tanh(Hout_ @ p["Wout"] + p["bout"])
    H = jnp.concatenate([Hin, Hout], -1).reshape(B, N, F, 2).max(-1)
    cur_a = jnp.mean(H, axis=1) @ p["Wa"]                       # (B, 1)
    g_ = jnp.ones((N, G), jnp.float32) * cur_a[:, None, :]      # (B, N, G)
    h_input = jnp.concatenate([g_, H], -1).reshape(-1, F + G)
    h = prev_emb.reshape(-1, F)
    c = prev_mem.reshape(-1, F)
    I = jax.nn.sigmoid(h_input @ p["Wi_n"] + h @ p["Ui_n"] + p["bf_n"])  # bf_n (torch bug)
    Fg = jax.nn.sigmoid(h_input @ p["Wf_n"] + h @ p["Uf_n"] + p["bf_n"])
    O = jax.nn.sigmoid(h_input @ p["Wo_n"] + h @ p["Uo_n"] + p["bo_n"])
    C_ = jnp.tanh(h_input @ p["Wc_n"] + (Fg * h) @ p["Uc_n"] + p["bc_n"])
    Ct = Fg * c + I * C_
    return O * jnp.tanh(Ct), Ct, cur_a


# -----------------------------------------------------------------------------
if __name__ == "__main__":
    B, N, F, G = 2, 8, 32, 32   # batch, n_shapelets, node_dim, graph_dim

    params = make_params(F, G)
    cslab = pack_params(params, B, N)          # built once, host side (hoisted)

    key = jax.random.PRNGKey(0)
    k1, k2, k3, k4 = jax.random.split(key, 4)

    # ---- single-step check: matches torch forward (initial state = ones) ----
    send = jax.random.normal(k1, (B, N), dtype=jnp.float32)
    recv = jax.random.normal(k2, (B, N), dtype=jnp.float32)
    prev_emb = jnp.ones((B, N, F), jnp.float32)
    prev_mem = jnp.ones((B, N, F), jnp.float32)

    node_emb, cur_a = evo_lstm_cell_pallas(send, recv, prev_emb, prev_mem, cslab)
    jax.block_until_ready((node_emb, cur_a))

    ref_emb, _, ref_a = reference_step(send, recv, prev_emb, prev_mem, params)
    np.testing.assert_allclose(np.asarray(node_emb), np.asarray(ref_emb),
                               rtol=1e-3, atol=1e-3)
    np.testing.assert_allclose(np.asarray(cur_a), np.asarray(ref_a),
                               rtol=1e-3, atol=1e-3)
    assert node_emb.shape == (B * N, F) and cur_a.shape == (B, 1)

    # ---- fused multi-sequence / multi-step check (grid = (S, T)) ------------
    S, T = 2, 4
    send_seq = jax.random.normal(k3, (S, T, B, N), dtype=jnp.float32)
    recv_seq = jax.random.normal(k4, (S, T, B, N), dtype=jnp.float32)
    init_emb = jnp.ones((S, B, N, F), jnp.float32)
    init_mem = jnp.ones((S, B, N, F), jnp.float32)

    emb_seq, a_seq = evo_lstm_seq_pallas(send_seq, recv_seq, init_emb, init_mem, cslab)
    jax.block_until_ready((emb_seq, a_seq))

    for s in range(S):
        e, m = init_emb[s], init_mem[s]
        for t in range(T):
            re, rm, ra = reference_step(send_seq[s, t], recv_seq[s, t], e, m, params)
            np.testing.assert_allclose(np.asarray(emb_seq[s, t]), np.asarray(re),
                                       rtol=1e-3, atol=1e-3)
            np.testing.assert_allclose(np.asarray(a_seq[s, t]), np.asarray(ra),
                                       rtol=1e-3, atol=1e-3)
            e, m = re.reshape(B, N, F), rm.reshape(B, N, F)

    print("KERNEL_OK")
</pallas_src>

<mosaic_0001>
module attributes {stable_mosaic.version = 11 : i64} {
  func.func @kernel(%arg0: i32, %arg1: i32, %arg2: memref<96x417xf32, #tpu.memory_space<vmem>>, %arg3: memref<1x1x16x2xf32, #tpu.memory_space<vmem>>, %arg4: memref<1x16x64xf32, #tpu.memory_space<vmem>>, %arg5: memref<1x1x18x32xf32, #tpu.memory_space<vmem>>, %arg6: memref<16x32xf32, #tpu.memory_space<vmem>>, %arg7: memref<16x32xf32, #tpu.memory_space<vmem>>) attributes {dimension_semantics = [#tpu.dimension_semantics<parallel>, #tpu.dimension_semantics<arbitrary>], iteration_bounds = array<i64: 1, 1>, scalar_prefetch = 0 : i64, scratch_operands = 2 : i64, tpu.core_type = #tpu.core_type<tc>, window_params = [{pipeline_mode = #tpu.pipeline_mode<synchronous>, transform_indices = @transform_0, window_bounds = array<i64: 96, 417>}, {transform_indices = @transform_1, window_bounds = array<i64: 1, 1, 16, 2>}, {transform_indices = @transform_2, window_bounds = array<i64: 1, 16, 64>}, {transform_indices = @transform_3, window_bounds = array<i64: 1, 1, 18, 32>}]} {
    %c0_i32 = arith.constant 0 : i32
    %0 = arith.cmpi eq, %arg1, %c0_i32 : i32
    %1 = arith.extui %0 : i1 to i32
    %c0_i32_0 = arith.constant 0 : i32
    %2 = arith.cmpi ne, %1, %c0_i32_0 : i32
    scf.if %2 {
      %c0_43 = arith.constant 0 : index
      %c0_44 = arith.constant 0 : index
      %c0_45 = arith.constant 0 : index
      %88 = vector.load %arg4[%c0_43, %c0_44, %c0_45] : memref<1x16x64xf32, #tpu.memory_space<vmem>>, vector<1x16x32xf32>
      %89 = vector.shape_cast %88 : vector<1x16x32xf32> to vector<16x32xf32>
      %c0_46 = arith.constant 0 : index
      %c0_47 = arith.constant 0 : index
      %90 = vector.load %arg6[%c0_46, %c0_47] : memref<16x32xf32, #tpu.memory_space<vmem>>, vector<16x32xf32>
      tpu.vector_store %arg6[%c0_46, %c0_47], %89 {strides = array<i32>} : memref<16x32xf32, #tpu.memory_space<vmem>>, vector<16x32xf32>,
      %c0_48 = arith.constant 0 : index
      %c0_49 = arith.constant 0 : index
      %c32 = arith.constant 32 : index
      %91 = vector.load %arg4[%c0_48, %c0_49, %c32] : memref<1x16x64xf32, #tpu.memory_space<vmem>>, vector<1x16x32xf32>
      %92 = vector.shape_cast %91 : vector<1x16x32xf32> to vector<16x32xf32>
      %c0_50 = arith.constant 0 : index
      %c0_51 = arith.constant 0 : index
      %93 = vector.load %arg7[%c0_50, %c0_51] : memref<16x32xf32, #tpu.memory_space<vmem>>, vector<16x32xf32>
      tpu.vector_store %arg7[%c0_50, %c0_51], %92 {strides = array<i32>} : memref<16x32xf32, #tpu.memory_space<vmem>>, vector<16x32xf32>,
    } else {
    }
    %c0 = arith.constant 0 : index
    %c0_1 = arith.constant 0 : index
    %3 = vector.load %arg6[%c0, %c0_1] : memref<16x32xf32, #tpu.memory_space<vmem>>, vector<16x32xf32>
    %c0_2 = arith.constant 0 : index
    %c0_3 = arith.constant 0 : index
    %4 = vector.load %arg7[%c0_2, %c0_3] : memref<16x32xf32, #tpu.memory_space<vmem>>, vector<16x32xf32>
    %c0_4 = arith.constant 0 : index
    %c0_5 = arith.constant 0 : index
    %c0_6 = arith.constant 0 : index
    %c0_7 = arith.constant 0 : index
    %5 = vector.load %arg3[%c0_4, %c0_5, %c0_6, %c0_7] : memref<1x1x16x2xf32, #tpu.memory_space<vmem>>, vector<1x1x16x2xf32>
    %6 = vector.shape_cast %5 : vector<1x1x16x2xf32> to vector<16x2xf32>
    %7 = vector.extract_strided_slice %6 {offsets = [0, 0], sizes = [16, 1], strides = [1, 1]} : vector<16x2xf32> to vector<16x1xf32>
    %8 = vector.extract_strided_slice %6 {offsets = [0, 1], sizes = [16, 1], strides = [1, 1]} : vector<16x2xf32> to vector<16x1xf32>
    %c0_8 = arith.constant 0 : index
    %c0_9 = arith.constant 0 : index
    %9 = vector.load %arg2[%c0_8, %c0_9] : memref<96x417xf32, #tpu.memory_space<vmem>>, vector<32x128xf32>
    %c0_10 = arith.constant 0 : index
    %c128 = arith.constant 128 : index
    %10 = vector.load %arg2[%c0_10, %c128] : memref<96x417xf32, #tpu.memory_space<vmem>>, vector<32x128xf32>
    %c0_11 = arith.constant 0 : index
    %c256 = arith.constant 256 : index
    %11 = vector.load %arg2[%c0_11, %c256] : memref<96x417xf32, #tpu.memory_space<vmem>>, vector<64x128xf32>
    %c0_12 = arith.constant 0 : index
    %c384 = arith.constant 384 : index
    %12 = vector.load %arg2[%c0_12, %c384] : memref<96x417xf32, #tpu.memory_space<vmem>>, vector<32x32xf32>
    %c0_13 = arith.constant 0 : index
    %c416 = arith.constant 416 : index
    %13 = vector.load %arg2[%c0_13, %c416] : memref<96x417xf32, #tpu.memory_space<vmem>>, vector<32x1xf32>
    %c64 = arith.constant 64 : index
    %c0_14 = arith.constant 0 : index
    %14 = vector.load %arg2[%c64, %c0_14] : memref<96x417xf32, #tpu.memory_space<vmem>>, vector<1x64xf32>
    %c64_15 = arith.constant 64 : index
    %c128_16 = arith.constant 128 : index
    %15 = vector.load %arg2[%c64_15, %c128_16] : memref<96x417xf32, #tpu.memory_space<vmem>>, vector<1x128xf32>
    %c64_17 = arith.constant 64 : index
    %c256_18 = arith.constant 256 : index
    %16 = vector.load %arg2[%c64_17, %c256_18] : memref<96x417xf32, #tpu.memory_space<vmem>>, vector<1x128xf32>
    %c72 = arith.constant 72 : index
    %c0_19 = arith.constant 0 : index
    %17 = vector.load %arg2[%c72, %c0_19] : memref<96x417xf32, #tpu.memory_space<vmem>>, vector<2x16xf32>
    %c80 = arith.constant 80 : index
    %c0_20 = arith.constant 0 : index
    %18 = vector.load %arg2[%c80, %c0_20] : memref<96x417xf32, #tpu.memory_space<vmem>>, vector<16x2xf32>
    %19 = vector.broadcast %8 : vector<16x1xf32> to vector<16x32xf32>
    %20 = arith.mulf %19, %3 : vector<16x32xf32>
    %21 = vector.broadcast %7 : vector<16x1xf32> to vector<16x32xf32>
    %22 = arith.mulf %21, %3 : vector<16x32xf32>
    %23 = tpu.concatenate %20, %22 in 1 : vector<16x32xf32>, vector<16x32xf32> -> vector<16x64xf32>
    %cst = arith.constant dense<0.000000e+00> : vector<2x64xf32>
    %24 = tpu.matmul %17, %23, %cst {dimension_numbers = #tpu.dot_dimension_numbers<[1], [0], [0], [1], [0, 0, 1, 1], [], []>} : vector<2x16xf32>, vector<16x64xf32>, vector<2x64xf32> -> vector<2x64xf32>
    %cst_21 = arith.constant dense<0.000000e+00> : vector<2x128xf32>
    %25 = tpu.matmul %24, %11, %cst_21 {dimension_numbers = #tpu.dot_dimension_numbers<[1], [0], [0], [1], [0, 0, 1, 1], [], []>} : vector<2x64xf32>, vector<64x128xf32>, vector<2x128xf32> -> vector<2x128xf32>
    %cst_22 = arith.constant dense<0.000000e+00> : vector<16x128xf32>
    %26 = tpu.matmul %18, %25, %cst_22 {dimension_numbers = #tpu.dot_dimension_numbers<[1], [0], [0], [1], [0, 0, 1, 1], [], []>} : vector<16x2xf32>, vector<2x128xf32>, vector<16x128xf32> -> vector<16x128xf32>
    %27 = vector.extract_strided_slice %26 {offsets = [0, 0], sizes = [16, 64], strides = [1, 1]} : vector<16x128xf32> to vector<16x64xf32>
    %28 = vector.broadcast %7 : vector<16x1xf32> to vector<16x64xf32>
    %29 = arith.mulf %28, %27 : vector<16x64xf32>
    %30 = vector.extract_strided_slice %26 {offsets = [0, 64], sizes = [16, 64], strides = [1, 1]} : vector<16x128xf32> to vector<16x64xf32>
    %31 = vector.broadcast %8 : vector<16x1xf32> to vector<16x64xf32>
    %32 = arith.mulf %31, %30 : vector<16x64xf32>
    %33 = arith.addf %29, %32 : vector<16x64xf32>
    %34 = vector.broadcast %14 : vector<1x64xf32> to vector<16x64xf32>
    %35 = arith.addf %33, %34 : vector<16x64xf32>
    %36 = math.tanh %35 : vector<16x64xf32>
    %37 = vector.extract_strided_slice %36 {offsets = [0, 0], sizes = [16, 32], strides = [1, 1]} : vector<16x64xf32> to vector<16x32xf32>
    %38 = vector.extract_strided_slice %36 {offsets = [0, 32], sizes = [16, 32], strides = [1, 1]} : vector<16x64xf32> to vector<16x32xf32>
    %39 = arith.maximumf %37, %38 : vector<16x32xf32>
    %cst_23 = arith.constant dense<0.000000e+00> : vector<2x32xf32>
    %40 = tpu.matmul %17, %39, %cst_23 {dimension_numbers = #tpu.dot_dimension_numbers<[1], [0], [0], [1], [0, 0, 1, 1], [], []>} : vector<2x16xf32>, vector<16x32xf32>, vector<2x32xf32> -> vector<2x32xf32>
    %cst_24 = arith.constant dense<0.000000e+00> : vector<2x1xf32>
    %41 = tpu.matmul %40, %13, %cst_24 {dimension_numbers = #tpu.dot_dimension_numbers<[1], [0], [0], [1], [0, 0, 1, 1], [], []>} : vector<2x32xf32>, vector<32x1xf32>, vector<2x1xf32> -> vector<2x1xf32>
    %42 = vector.broadcast %41 : vector<2x1xf32> to vector<2x128xf32>
    %43 = vector.broadcast %16 : vector<1x128xf32> to vector<2x128xf32>
    %44 = arith.mulf %42, %43 : vector<2x128xf32>
    %cst_25 = arith.constant dense<0.000000e+00> : vector<16x128xf32>
    %45 = tpu.matmul %18, %44, %cst_25 {dimension_numbers = #tpu.dot_dimension_numbers<[1], [0], [0], [1], [0, 0, 1, 1], [], []>} : vector<16x2xf32>, vector<2x128xf32>, vector<16x128xf32> -> vector<16x128xf32>
    %cst_26 = arith.constant dense<0.000000e+00> : vector<16x128xf32>
    %46 = tpu.matmul %39, %9, %cst_26 {dimension_numbers = #tpu.dot_dimension_numbers<[1], [0], [0], [1], [0, 0, 1, 1], [], []>} : vector<16x32xf32>, vector<32x128xf32>, vector<16x128xf32> -> vector<16x128xf32>
    %cst_27 = arith.constant dense<0.000000e+00> : vector<16x128xf32>
    %47 = tpu.matmul %3, %10, %cst_27 {dimension_numbers = #tpu.dot_dimension_numbers<[1], [0], [0], [1], [0, 0, 1, 1], [], []>} : vector<16x32xf32>, vector<32x128xf32>, vector<16x128xf32> -> vector<16x128xf32>
    %48 = arith.addf %46, %47 : vector<16x128xf32>
    %49 = arith.addf %48, %45 : vector<16x128xf32>
    %50 = vector.broadcast %15 : vector<1x128xf32> to vector<16x128xf32>
    %51 = arith.addf %49, %50 : vector<16x128xf32>
    %52 = vector.extract_strided_slice %51 {offsets = [0, 0], sizes = [16, 32], strides = [1, 1]} : vector<16x128xf32> to vector<16x32xf32>
    %53 = arith.negf %52 : vector<16x32xf32>
    %54 = math.exp %53 : vector<16x32xf32>
    %cst_28 = arith.constant 1.000000e+00 : f32
    %55 = vector.broadcast %cst_28 : f32 to vector<16x32xf32>
    %56 = arith.addf %55, %54 : vector<16x32xf32>
    %57 = arith.divf %55, %56 : vector<16x32xf32>
    %58 = vector.extract_strided_slice %51 {offsets = [0, 32], sizes = [16, 32], strides = [1, 1]} : vector<16x128xf32> to vector<16x32xf32>
    %59 = arith.negf %58 : vector<16x32xf32>
    %60 = math.exp %59 : vector<16x32xf32>
    %cst_29 = arith.constant 1.000000e+00 : f32
    %61 = vector.broadcast %cst_29 : f32 to vector<16x32xf32>
    %62 = arith.addf %61, %60 : vector<16x32xf32>
    %63 = arith.divf %61, %62 : vector<16x32xf32>
    %64 = vector.extract_strided_slice %51 {offsets = [0, 64], sizes = [16, 32], strides = [1, 1]} : vector<16x128xf32> to vector<16x32xf32>
    %65 = arith.negf %64 : vector<16x32xf32>
    %66 = math.exp %65 : vector<16x32xf32>
    %cst_30 = arith.constant 1.000000e+00 : f32
    %67 = vector.broadcast %cst_30 : f32 to vector<16x32xf32>
    %68 = arith.addf %67, %66 : vector<16x32xf32>
    %69 = arith.divf %67, %68 : vector<16x32xf32>
    %70 = vector.extract_strided_slice %51 {offsets = [0, 96], sizes = [16, 32], strides = [1, 1]} : vector<16x128xf32> to vector<16x32xf32>
    %71 = arith.mulf %63, %3 : vector<16x32xf32>
    %cst_31 = arith.constant dense<0.000000e+00> : vector<16x32xf32>
    %72 = tpu.matmul %71, %12, %cst_31 {dimension_numbers = #tpu.dot_dimension_numbers<[1], [0], [0], [1], [0, 0, 1, 1], [], []>} : vector<16x32xf32>, vector<32x32xf32>, vector<16x32xf32> -> vector<16x32xf32>
    %73 = arith.addf %70, %72 : vector<16x32xf32>
    %74 = math.tanh %73 : vector<16x32xf32>
    %75 = arith.mulf %63, %4 : vector<16x32xf32>
    %76 = arith.mulf %57, %74 : vector<16x32xf32>
    %77 = arith.addf %75, %76 : vector<16x32xf32>
    %78 = math.tanh %77 : vector<16x32xf32>
    %79 = arith.mulf %69, %78 : vector<16x32xf32>
    %c0_32 = arith.constant 0 : index
    %c0_33 = arith.constant 0 : index
    %c0_34 = arith.constant 0 : index
    %c0_35 = arith.constant 0 : index
    %80 = vector.load %arg5[%c0_32, %c0_33, %c0_34, %c0_35] : memref<1x1x18x32xf32, #tpu.memory_space<vmem>>, vector<1x1x16x32xf32>
    %81 = vector.shape_cast %80 : vector<1x1x16x32xf32> to vector<16x32xf32>
    %82 = vector.shape_cast %79 : vector<16x32xf32> to vector<1x1x16x32xf32>
    tpu.vector_store %arg5[%c0_32, %c0_33, %c0_34, %c0_35], %82 {strides = array<i32>} : memref<1x1x18x32xf32, #tpu.memory_space<vmem>>, vector<1x1x16x32xf32>,
    %c0_36 = arith.constant 0 : index
    %c0_37 = arith.constant 0 : index
    %c16 = arith.constant 16 : index
    %c0_38 = arith.constant 0 : index
    %83 = vector.load %arg5[%c0_36, %c0_37, %c16, %c0_38] : memref<1x1x18x32xf32, #tpu.memory_space<vmem>>, vector<1x1x2x1xf32>
    %84 = vector.shape_cast %83 : vector<1x1x2x1xf32> to vector<2x1xf32>
    %85 = vector.shape_cast %41 : vector<2x1xf32> to vector<1x1x2x1xf32>
    tpu.vector_store %arg5[%c0_36, %c0_37, %c16, %c0_38], %85 {strides = array<i32>} : memref<1x1x18x32xf32, #tpu.memory_space<vmem>>, vector<1x1x2x1xf32>,
    %c0_39 = arith.constant 0 : index
    %c0_40 = arith.constant 0 : index
    %86 = vector.load %arg6[%c0_39, %c0_40] : memref<16x32xf32, #tpu.memory_space<vmem>>, vector<16x32xf32>
    tpu.vector_store %arg6[%c0_39, %c0_40], %79 {strides = array<i32>} : memref<16x32xf32, #tpu.memory_space<vmem>>, vector<16x32xf32>,
    %c0_41 = arith.constant 0 : index
    %c0_42 = arith.constant 0 : index
    %87 = vector.load %arg7[%c0_41, %c0_42] : memref<16x32xf32, #tpu.memory_space<vmem>>, vector<16x32xf32>
    tpu.vector_store %arg7[%c0_41, %c0_42], %77 {strides = array<i32>} : memref<16x32xf32, #tpu.memory_space<vmem>>, vector<16x32xf32>,
    return
  }
  func.func @transform_0(%arg0: i32, %arg1: i32) -> (i32, i32) {
    %c0_i32 = arith.constant 0 : i32
    %c0_i32_0 = arith.constant 0 : i32
    %c0_i32_1 = arith.constant 0 : i32
    return %c0_i32, %c0_i32_0 : i32, i32
  }
  func.func @transform_1(%arg0: i32, %arg1: i32) -> (i32, i32, i32, i32) {
    %c0_i32 = arith.constant 0 : i32
    %c0_i32_0 = arith.constant 0 : i32
    %c0_i32_1 = arith.constant 0 : i32
    return %arg0, %arg1, %c0_i32, %c0_i32_0 : i32, i32, i32, i32
  }
  func.func @transform_2(%arg0: i32, %arg1: i32) -> (i32, i32, i32) {
    %c0_i32 = arith.constant 0 : i32
    %c0_i32_0 = arith.constant 0 : i32
    %c0_i32_1 = arith.constant 0 : i32
    return %arg0, %c0_i32, %c0_i32_0 : i32, i32, i32
  }
  func.func @transform_3(%arg0: i32, %arg1: i32) -> (i32, i32, i32, i32) {
    %c0_i32 = arith.constant 0 : i32
    %c0_i32_0 = arith.constant 0 : i32
    %c0_i32_1 = arith.constant 0 : i32
    return %arg0, %arg1, %c0_i32, %c0_i32_0 : i32, i32, i32, i32
  }
}

</mosaic_0001>

<bundles_post_ra>
// kernel: evo_lstm_seq_pallas.1
= control target key start
LH: loop header
LB: loop body
LE: loop exit
PB: predicated region body
PF: predicated region fallthrough
CT: control target
= control target key end

     0   :  { %8 = vsyncpa [#allocation5], 0  ;;  %s1246_s12 = smov [#allocation4]   ;;  %s1422_s0 = inlined_call_operand.hbm [shape: f32[96,417], index: 0, kind: input, shape index: {}]   ;;  %s1423_s1 = inlined_call_operand.vmem [shape: f32[1,1,16,2], index: 1, kind: input, shape index: {}]   ;;  %s1424_s2 = inlined_call_operand.vmem [shape: f32[1,16,64], index: 2, kind: input, shape index: {}]   ;;  %s1425_s3 = inlined_call_operand.vmem [shape: f32[1,1,18,32], index: 3, kind: output, shape index: {}]  }
   0x1   :  { %s14_s13 = sshll.u32 %s1246_s12, 4  ;;  %s1222_s16 = scalar_lea.hbm %s1422_s0, 6144  ;;  %s15_s13 = int_to_ptr.vmem [resolvable:$true] %s14_s13 }
   0x2   :  { %p1223_p0 = scmp.ne.s32.totalorder %s1422_s0, %s1222_s16  ;;  %p1226_p1 = scmp.lt.u32.totalorder %s1222_s16, %s1422_s0 }
   0x4   :  { %p1228_p2 = pnand %p1226_p1, %p1223_p0 }
   0x6   :  { %1231 = shalt.err (!%p1228_p2)
}
   0x7   :  { %s1232_s21 = scalar_lea.vmem %s15_s13, 6144  ;;  %p1237_p4 = scmp.lt.s32.totalorder %s15_s13, %s15_s13 }
   0x8   :  { %p1233_p3 = scmp.ne.s32.totalorder %s15_s13, %s1232_s21  ;;  %p1238_p5 = scmp.lt.s32.totalorder %s1232_s21, %s1232_s21 }
   0xa   :  { %p1239_p6 = por %p1238_p5, %p1237_p4 }
   0xc   :  { %p1240_p7 = pnand %p1239_p6, %p1233_p3 }
   0xe   :  { %1243 = shalt.err (!%p1240_p7)
}
   0xf   :  { %s1247_s22 = smov 512   ;;  %s1248_s23 = smov 32  }
  0x10   :  { %20 = dma.hbm_to_vmem [thread:$0]  %s1422_s0, 6144, %s15_s13, [#allocation5], %s1247_s22, %s1247_s22, %s1248_s23  }
  0x11   :  { %1244 = dma.done.wait [#allocation5], 6144  }
  0x12   :  { %1245 = vsyncadd [#allocation5], 4294961152  ;;  %v1249_v0 = vmov 0   ;;  %v1250_v1 = vmov 1   ;;  %vm34_vm0 = vcmask 261120   ;;  %v53_v2 = vld [vmem:[%s1423_s1] sm:$0xff] }
  0x13   :  { %1184 = vset.pattern.permute.xlu0 %v1249_v0  ;;  %1185 = vset.pattern.permute.xlu1 %v1250_v1  ;;  %v1295_v3 = vld [vmem:[%s1424_s2] sm:$0xff]  ;;  %v1302_v4 = vld [vmem:[%s1424_s2 + $0x8] sm:$0xff]  ;;  %v1251_v6 = vmov 0.0|0.0   ;;  %vm1252_vm1 = vmmov 0   ;;  %v1253_v10 = vmov 0.0   ;;  %v63_v12 = vld [vmem:[#allocation4 + $0x10] sm:$0xff] }
  0x14   :  { %94 = vperm.xlu0 %1184, %v53_v2   ;;  %83 = vperm.xlu1 %1185, %v53_v2   ;;  %35 = vst.msk [vmem:[#allocation2] sm:$0xff] %vm34_vm0, %v1295_v3  ;;  %v54_v5 = vld [vmem:[%s1423_s1 + $0x8] sm:$0xff]  ;;  %36 = vst.msk [vmem:[#allocation2 + $0x8] sm:$0xff] %vm34_vm0, %v1302_v4  ;;  %v64_v13 = vld [vmem:[#allocation4 + $0x30] sm:$0xff]  ;;  %vm114_vm2 = vcmask 130048   ;;  %vm188_vm3 = vcmask 523264  }
  0x15   :  { %1122 = vmatprep.subr.bf16.mxu0 %v1251_v6  ;;  %1125 = vmatprep.subr.bf16.mxu1 %v1251_v6  ;;  %v65_v14 = vld [vmem:[#allocation4 + $0x50] sm:$0xff]  ;;  %v1126_v17 = vpack.c.bf16 %v64_v13, %v63_v12  ;;  %v1335_v37 = vld [vmem:[#allocation4 + $0x120] sm:$0x3]  ;;  %vm262_vm4 = vcmask 15360   ;;  %vm269_vm5 = vcmask 1041408   ;;  %s1254_s1 = smov 64  }
  0x16   :  { %1039 = vmatprep.mubr.msk.f32.mxu0 %vm1252_vm1, %v1253_v10  ;;  %1058 = vmatprep.mubr.msk.f32.mxu1 %vm1252_vm1, %v1253_v10  ;;  %v66_v18 = vld [vmem:[#allocation4 + $0x70] sm:$0xff]  ;;  %v1341_v40 = vld [vmem:[#allocation4 + $0x140] sm:$0xff]  ;;  %v59_v48 = vld [vmem:[#allocation4 + $0x8] sm:$0xff]  ;;  %s1255_s2 = smov 96   ;;  %vm954_vm6 = vcmask 1024  }
  0x17   :  { %1127 = vmatpush3.bf16.msra.mxu1 %v1126_v17  ;;  %v1129_v20 = vpack.c.bf16 %v66_v18, %v65_v14  ;;  %v67_v21 = vld [vmem:[#allocation4 + $0x90] sm:$0xff]  ;;  %v1345_v42 = vld [vmem:[#allocation4 + $0x160] sm:$0xff]  ;;  %v60_v49 = vld [vmem:[#allocation4 + $0x28] sm:$0xff] }
  0x18   :  { %98 = vperm.xlu0 %1184, %v54_v5   ;;  %88 = vperm.xlu1 %1185, %v54_v5   ;;  %v68_v22 = vld [vmem:[#allocation4 + $0xb0] sm:$0xff]  ;;  %v61_v50 = vld [vmem:[#allocation4 + $0x48] sm:$0xff]  ;;  %v1146_v51 = vpack.c.bf16 %v60_v49, %v59_v48  ;;  %v55_v54 = vld [vmem:[#allocation4] sm:$0xff] }
  0x19   :  { %1128 = vmatprep.subr.bf16.mxu1 %v1251_v6  ;;  %v1132_v23 = vpack.c.bf16 %v68_v22, %v67_v21  ;;  %v69_v24 = vld [vmem:[#allocation4 + $0xd0] sm:$0xff]  ;;  %v62_v52 = vld [vmem:[#allocation4 + $0x68] sm:$0xff]  ;;  %v56_v55 = vld [vmem:[#allocation4 + $0x20] sm:$0xff] }
  0x1a   :  { %v70_v25 = vld [vmem:[#allocation4 + $0xf0] sm:$0xff]  ;;  %v1150_v53 = vpack.c.bf16 %v62_v52, %v61_v50  ;;  %v1154_v56 = vpack.c.bf16 %v56_v55, %v55_v54  ;;  %v75_v59 = vld [vmem:[#allocation4 + $0x100] ss:$0 sm:$0xff]  ;;  %v73_v13 = vld [vmem:[#allocation4 + $0x58] sm:$0xff] }
  0x1b   :  { %v1313_v8 = vld [vmem:[#allocation2] sm:$0xff]  ;;  %v1315_v9 = vld [vmem:[#allocation2 + $0x8] sm:$0xff]  ;;  %1130 = vmatpush3.bf16.msra.mxu1 %v1129_v20  ;;  %v1135_v26 = vpack.c.bf16 %v70_v25, %v69_v24  ;;  %v74_v14 = vld [vmem:[#allocation4 + $0x78] sm:$0xff] }
  0x1c   :  { %1201 = vset.pattern.permute.xlu1 %v1249_v0  ;;  %1131 = vmatprep.subr.bf16.mxu1 %v1251_v6  ;;  %v57_v61 = vld [vmem:[#allocation4 + $0x40] sm:$0xff]  ;;  %v1196_v17 = vpack.i.bf16 %v74_v14, %v73_v13 }
  0x1d   :  { %v58_v62 = vld [vmem:[#allocation4 + $0x60] sm:$0xff] }
  0x1e   :  { %v1158_v1 = vpack.c.bf16 %v58_v62, %v57_v61 }
  0x1f   :  { %1133 = vmatpush3.bf16.msra.mxu1 %v1132_v23 }
  0x20   :  { %1134 = vmatprep.subr.bf16.mxu1 %v1251_v6 }
  0x23   :  { %1136 = vmatpush3.bf16.msra.mxu1 %v1135_v26 }
  0x24   :  { %1147 = vmatprep.subr.bf16.mxu1 %v1146_v51 }
  0x93   :  { %v1311_v7 = vpop.permute.xlu0 %94  ;;  %v84_v27 = vpop.permute.xlu1 %83 }
  0x94   :  { %v101_v15 = vmul.f32 %v1311_v7, %v1313_v8  ;;  %v91_v30 = vmul.f32 %v84_v27, %v1313_v8 }
  0x97   :  { %v1321_v11 = vpop.permute.xlu0 %98  ;;  %v89_v28 = vpop.permute.xlu1 %88 }
  0x98   :  { %v102_v16 = vmul.f32 %v1321_v11, %v1315_v9  ;;  %v92_v31 = vmul.f32 %v89_v28, %v1315_v9 }
  0x9a   :  { %v1186_v19 = vpack.i.bf16 %v102_v16, %v101_v15  ;;  %v71_v15 = vld [vmem:[#allocation4 + $0x18] sm:$0xff] }
  0x9c   :  { %1187 = vrot.lane.b32.xlu0 %v1186_v19, %s1248_s23 }
 0x10e   :  { %v1188_v29 = vpop.permute.xlu0 %1187 }
 0x10f   :  { %v1190_v32 = vunpack.i.h.bf16 %v1188_v29  ;;  %v1189_v33 = vunpack.i.l.bf16 %v1188_v29 }
 0x111   :  { %v112_v34 = vsel %vm34_vm0, %v91_v30, %v1189_v33  ;;  %v113_v35 = vsel %vm34_vm0, %v92_v31, %v1190_v32 }
 0x112   :  { %v1123_v36 = vpack.c.bf16 %v113_v35, %v112_v34 }
 0x114   :  { %1124 = vmatpush3.bf16.msra.mxu0 %v1123_v36 }
 0x117   :  { %1040 = vmatmul.mubr.msk.f32.vlgmr.msra.gmra.mrb[0].mxu0 %vm114_vm2, %v1335_v37 }
 0x118   :  { %1063 = vmatprep.mubr.msk.f32.mxu0 %vm262_vm4, %v1341_v40 }
 0x1ea   :  { %v184_v38 = vpop.f32.mrb[0].mxu0 }
 0x1eb   :  { %v1041_v39 = vpop.f32.mrb[1].mxu0  ;;  %1059 = vmatmul.mubr.msk.f32.vlgmr.msra.gmra.mrb[0].mxu1 %vm188_vm3, %v184_v38 }
 0x1ec   :  { %1097 = vmatprep.mubr.msk.f32.mxu1 %vm34_vm0, %v1313_v8  ;;  %1149 = vmatpush3.bf16.msra.mxu1 %v1146_v51  ;;  %v1166_v39 = vpack.c.bf16 %v74_v14, %v73_v13 }
 0x1ed   :  { %1151 = vmatprep.subr.bf16.mxu1 %v1150_v53 }
 0x1f0   :  { %1153 = vmatpush3.bf16.msra.mxu1 %v1150_v53 }
 0x1f1   :  { %1155 = vmatprep.subr.bf16.mxu1 %v1154_v56 }
 0x1f3   :  { %1098 = vmatmul.mubr.msk.f32.vlgmr.msra.gmra.mrb[2].mxu1 %vm34_vm0, %v1315_v9 }
 0x1f4   :  { %1157 = vmatpush3.bf16.msra.mxu1 %v1154_v56 }
 0x1f5   :  { %1159 = vmatprep.subr.bf16.mxu1 %v1158_v1 }
 0x1f8   :  { %1161 = vmatpush3.bf16.msra.mxu1 %v1158_v1 }
 0x2be   :  { %v258_v41 = vpop.f32.mrb[0].mxu1 }
 0x2bf   :  { %v1060_v43 = vpop.f32.mrb[1].mxu1  ;;  %1061 = vmatprep.subr.msk.mxu0 %vm269_vm5, %v258_v41 }
 0x2c0   :  { %1062 = vmatpush3.msk.msra.mxu0 %vm269_vm5, %v258_v41 }
 0x2c1   :  { %1064 = vmatmul.mubr.msk.f32.vlgmr.msra.gmra.mrb[2].mxu0 %vm262_vm4, %v1345_v42  ;;  %1137 = vmatprep.subr.bf16.mxu0 %v1251_v6 }
 0x2c2   :  { %1070 = vmatprep.mubr.msk.f32.mxu0 %vm1252_vm1, %v1253_v10 }
 0x394   :  { %v1065_v44 = vpop.f32.mrb[2].mxu0 }
 0x395   :  { %v351_v45 = vmul.f32 %v1065_v44, %v89_v28  ;;  %v339_v46 = vpop.f32.mrb[3].mxu0  ;;  %v349_v57 = vmul.f32 %v1065_v44, %v1321_v11  ;;  %v72_v11 = vld [vmem:[#allocation4 + $0x38] sm:$0xff] }
 0x396   :  { %v350_v47 = vmul.f32 %v339_v46, %v84_v27  ;;  %v348_v58 = vmul.f32 %v339_v46, %v1311_v7  ;;  %v1191_v18 = vpack.i.bf16 %v72_v11, %v71_v15  ;;  %v1162_v38 = vpack.c.bf16 %v72_v11, %v71_v15 }
 0x397   :  { %356 = vrot.lane.b32.xlu0 %v351_v45, %s1254_s1 }
 0x398   :  { %354 = vrot.lane.b32.xlu1 %v350_v47, %s1254_s1 }
 0x409   :  { %v357_v60 = vpop.permute.xlu0 %356 }
 0x40a   :  { %v361_v63 = vadd.f32 %v357_v60, %v349_v57  ;;  %v355_v0 = vpop.permute.xlu1 %354 }
 0x40b   :  { %v360_v2 = vadd.f32 %v355_v0, %v348_v58 }
 0x40c   :  { %v363_v5 = vadd.f32 %v361_v63, %v75_v59 }
 0x40d   :  { %v362_v12 = vadd.f32 %v360_v2, %v75_v59 }
 0x40e   :  { %1202 = vtanh.f32 %v363_v5 }
 0x40f   :  { %1204 = vtanh.f32 %v362_v12 }
 0x418   :  { %v1203_v16 = vpop.eup %1202 }
 0x419   :  { %v1205_v7 = vpop.eup %1204  ;;  %370 = vrot.lane.b32.xlu0 %v1203_v16, %s1255_s2 }
 0x41a   :  { %368 = vrot.lane.b32.xlu1 %v1205_v7, %s1255_s2 }
 0x41d   :  { %1197 = vrot.lane.b32.xlu0 %v1196_v17, %s1255_s2 }
 0x41e   :  { %1192 = vrot.lane.b32.xlu1 %v1191_v18, %s1255_s2 }
 0x421   :  { %797 = vrot.lane.b32.xlu0 %v1313_v8, %s1248_s23 }
 0x48b   :  { %v371_v19 = vpop.permute.xlu0 %370 }
 0x48c   :  { %v375_v20 = vmax.f32 %v1203_v16, %v371_v19  ;;  %v369_v21 = vpop.permute.xlu1 %368 }
 0x48d   :  { %v374_v22 = vmax.f32 %v1205_v7, %v369_v21 }
 0x48f   :  { %v1138_v23 = vpack.c.bf16 %v375_v20, %v374_v22  ;;  %1108 = vmatprep.mubr.msk.f32.mxu1 %vm34_vm0, %v374_v22  ;;  %v1198_v24 = vpop.permute.xlu0 %1197 }
 0x490   :  { %1109 = vmatmul.mubr.msk.f32.vlgmr.msra.gmra.mrb[2].mxu1 %vm34_vm0, %v375_v20  ;;  %v1193_v25 = vpop.permute.xlu1 %1192  ;;  %v1200_v28 = vunpack.i.h.bf16 %v1198_v24  ;;  %v1199_v29 = vunpack.i.l.bf16 %v1198_v24 }
 0x491   :  { %1139 = vmatpush3.bf16.msra.mxu0 %v1138_v23  ;;  %v1195_v26 = vunpack.i.h.bf16 %v1193_v25  ;;  %v1194_v27 = vunpack.i.l.bf16 %v1193_v25 }
 0x492   :  { %1140 = vmatprep.subr.bf16.mxu0 %v1251_v6  ;;  %v1144_v8 = vpack.c.bf16 %v1200_v28, %v1199_v29 }
 0x493   :  { %v1141_v30 = vpack.c.bf16 %v1195_v26, %v1194_v27  ;;  %v798_v53 = vpop.permute.xlu0 %797 }
 0x494   :  { %1071 = vmatmul.mubr.msk.f32.vlgmr.msra.gmra.mrb[4].mxu0 %vm114_vm2, %v1335_v37 }
 0x495   :  { %1142 = vmatpush3.bf16.msra.mxu0 %v1141_v30  ;;  %1081 = vmatprep.mubr.msk.f32.mxu0 %vm1252_vm1, %v1253_v10 }
 0x496   :  { %1143 = vmatprep.subr.bf16.mxu0 %v1251_v6  ;;  %v77_v6 = vld [vmem:[#allocation4 + $0x110] ss:$0 sm:$0xff] }
 0x499   :  { %1145 = vmatpush3.bf16.msra.mxu0 %v1144_v8 }
 0x563   :  { %v1110_v31 = vpop.f32.mrb[2].mxu1 }
 0x564   :  { %v772_v32 = vpop.f32.mrb[3].mxu1 }
 0x567   :  { %v442_v33 = vpop.f32.mrb[4].mxu0 }
 0x568   :  { %v1072_v34 = vpop.f32.mrb[5].mxu0  ;;  %1082 = vmatmul.mubr.msk.f32.vlgmr.msra.gmra.mrb[6].mxu0 %vm34_vm0, %v442_v33 }
 0x569   :  { %1086 = vmatprep.mubr.msk.f32.mxu0 %vm262_vm4, %v1341_v40  ;;  %v76_v40 = vld [vmem:[#allocation4 + $0x108] ss:$0 sm:$0xff] }
 0x63b   :  { %v531_v35 = vpop.f32.mrb[6].mxu0 }
 0x63c   :  { %955 = vst.msk [vmem:[%s1425_s3 + $0x10] sm:$0x3] %vm954_vm6, %v531_v35  ;;  %537 = vperm.xlu1 %1201, %v531_v35   ;;  %v1083_v10 = vpop.f32.mrb[7].mxu0 }
 0x640   :  { %799 = vrot.lane.b32.xlu1 %v1315_v9, %s1248_s23 }
 0x6bb   :  { %v538_v36 = vpop.permute.xlu1 %537 }
 0x6bc   :  { %v540_v37 = vmul.f32 %v538_v36, %v77_v6 }
 0x6be   :  { %1084 = vmatprep.subr.msk.mxu0 %vm269_vm5, %v540_v37 }
 0x6bf   :  { %1085 = vmatpush3.msk.msra.mxu0 %vm269_vm5, %v540_v37  ;;  %v800_v52 = vpop.permute.xlu1 %799 }
 0x6c0   :  { %1087 = vmatmul.mubr.msk.f32.vlgmr.msra.gmra.mrb[8].mxu0 %vm262_vm4, %v1345_v42  ;;  %1163 = vmatprep.subr.bf16.mxu0 %v1162_v38 }
 0x6c1   :  { %1165 = vmatpush3.bf16.msra.mxu0 %v1162_v38 }
 0x6c2   :  { %1167 = vmatprep.subr.bf16.mxu0 %v1166_v39 }
 0x6c5   :  { %1169 = vmatpush3.bf16.msra.mxu0 %v1166_v39 }
 0x793   :  { %v1088_v41 = vpop.f32.mrb[8].mxu0 }
 0x794   :  { %v1170_v43 = vadd.f32 %v1110_v31, %v1088_v41  ;;  %v610_v9 = vpop.f32.mrb[9].mxu0 }
 0x795   :  { %v1171_v44 = vadd.f32 %v772_v32, %v610_v9 }
 0x796   :  { %v784_v45 = vadd.f32 %v1170_v43, %v76_v40 }
 0x797   :  { %v783_v46 = vadd.f32 %v1171_v44, %v76_v40 }
 0x798   :  { %v988_v47 = vmul.f32 -1.442695, %v784_v45 }
 0x799   :  { %v987_v48 = vmul.f32 -1.442695, %v783_v46 }
 0x79a   :  { %1206 = vpow2.f32 %v988_v47 }
 0x79b   :  { %1208 = vpow2.f32 %v987_v48 }
 0x7a4   :  { %v1207_v49 = vpop.eup %1206 }
 0x7a5   :  { %v1209_v50 = vpop.eup %1208  ;;  %v792_v42 = vadd.f32 1.0, %v1207_v49 }
 0x7a6   :  { %v791_v51 = vadd.f32 1.0, %v1209_v50 }
 0x7a7   :  { %1210 = vrcp.f32 %v792_v42 }
 0x7a8   :  { %1212 = vrcp.f32 %v791_v51 }
 0x7b1   :  { %v1211_v54 = vpop.eup %1210 }
 0x7b2   :  { %v1213_v55 = vpop.eup %1212  ;;  %v804_v56 = vmul.f32 %v1211_v54, %v800_v52 }
 0x7b3   :  { %v803_v57 = vmul.f32 %v1213_v55, %v798_v53 }
 0x7b4   :  { %809 = vrot.lane.b32.xlu1 %v804_v56, %s1255_s2 }
 0x7b5   :  { %807 = vrot.lane.b32.xlu0 %v803_v57, %s1255_s2 }
 0x826   :  { %v810_v59 = vpop.permute.xlu1 %809 }
 0x827   :  { %v808_v58 = vpop.permute.xlu0 %807 }
 0x828   :  { %1119 = vmatprep.mubr.msk.f32.mxu0 %vm34_vm0, %v808_v58 }
 0x829   :  { %1120 = vmatmul.mubr.msk.f32.vlgmr.msra.gmra.mrb[10].mxu0 %vm34_vm0, %v810_v59 }
 0x8fc   :  { %v1121_v60 = vpop.f32.mrb[10].mxu0 }
 0x8fd   :  { %894 = vrot.lane.b32.xlu1 %v1121_v60, %s1255_s2  ;;  %v881_v61 = vpop.f32.mrb[11].mxu0 }
 0x8fe   :  { %892 = vrot.lane.b32.xlu0 %v881_v61, %s1255_s2 }
 0x901   :  { %43 = vrot.lane.b32.xlu1 %v1302_v4, %s1255_s2 }
 0x902   :  { %41 = vrot.lane.b32.xlu0 %v1295_v3, %s1255_s2 }
 0x96f   :  { %v895_v62 = vpop.permute.xlu1 %894 }
 0x970   :  { %v899_v63 = vadd.f32 %v895_v62, %v784_v45  ;;  %v893_v0 = vpop.permute.xlu0 %892 }
 0x971   :  { %v898_v1 = vadd.f32 %v893_v0, %v783_v46 }
 0x972   :  { %1214 = vtanh.f32 %v899_v63 }
 0x973   :  { %1216 = vtanh.f32 %v898_v1  ;;  %v44_v2 = vpop.permute.xlu1 %43 }
 0x974   :  { %48 = vst.msk [vmem:[#allocation3 + $0x8] sm:$0xff] %vm34_vm0, %v44_v2  ;;  %v42_v5 = vpop.permute.xlu0 %41 }
 0x975   :  { %47 = vst.msk [vmem:[#allocation3] sm:$0xff] %vm34_vm0, %v42_v5 }
 0x97b   :  { %v52_v4 = vld [vmem:[#allocation3 + $0x8] sm:$0xff] }
 0x97c   :  { %v1215_v12 = vpop.eup %1214  ;;  %v51_v3 = vld [vmem:[#allocation3] sm:$0xff] }
 0x97d   :  { %v1217_v13 = vpop.eup %1216  ;;  %916 = vrot.lane.b32.xlu1 %v1215_v12, %s1248_s23 }
 0x97e   :  { %914 = vrot.lane.b32.xlu0 %v1217_v13, %s1248_s23 }
 0x981   :  { %906 = vrot.lane.b32.xlu1 %v52_v4, %s1248_s23 }
 0x982   :  { %904 = vrot.lane.b32.xlu0 %v51_v3, %s1248_s23 }
 0x9ef   :  { %v917_v14 = vpop.permute.xlu1 %916 }
 0x9f0   :  { %v921_v15 = vmul.f32 %v1211_v54, %v917_v14  ;;  %v915_v11 = vpop.permute.xlu0 %914 }
 0x9f1   :  { %v920_v16 = vmul.f32 %v1213_v55, %v915_v11 }
 0x9f2   :  { %926 = vrot.lane.b32.xlu1 %v921_v15, %s1248_s23 }
 0x9f3   :  { %924 = vrot.lane.b32.xlu0 %v920_v16, %s1248_s23  ;;  %v907_v7 = vpop.permute.xlu1 %906 }
 0x9f4   :  { %v905_v17 = vpop.permute.xlu0 %904  ;;  %v911_v18 = vmul.f32 %v1211_v54, %v907_v7 }
 0x9f5   :  { %v910_v19 = vmul.f32 %v1213_v55, %v905_v17 }
 0xa64   :  { %v927_v20 = vpop.permute.xlu1 %926 }
 0xa65   :  { %v931_v21 = vadd.f32 %v927_v20, %v911_v18  ;;  %v925_v22 = vpop.permute.xlu0 %924 }
 0xa66   :  { %v930_v23 = vadd.f32 %v925_v22, %v910_v19 }
 0xa67   :  { %1218 = vtanh.f32 %v931_v21 }
 0xa68   :  { %1220 = vtanh.f32 %v930_v23 }
 0xa71   :  { %v1219_v24 = vpop.eup %1218 }
 0xa72   :  { %v1221_v25 = vpop.eup %1220  ;;  %938 = vrot.lane.b32.xlu1 %v1219_v24, %s1248_s23 }
 0xa73   :  { %936 = vrot.lane.b32.xlu0 %v1221_v25, %s1248_s23 }
 0xae4   :  { %v939_v26 = vpop.permute.xlu1 %938 }
 0xae5   :  { %v943_v27 = vmul.f32 %v1211_v54, %v939_v26  ;;  %v937_v28 = vpop.permute.xlu0 %936 }
 0xae6   :  { %v942_v29 = vmul.f32 %v1213_v55, %v937_v28 }
 0xae7   :  { %948 = vrot.lane.b32.xlu1 %v943_v27, %s1254_s1 }
 0xae8   :  { %946 = vrot.lane.b32.xlu0 %v942_v29, %s1254_s1 }
 0xaeb   :  { %962 = vrot.lane.b32.xlu1 %v931_v21, %s1255_s2 }
 0xaec   :  { %960 = vrot.lane.b32.xlu0 %v930_v23, %s1255_s2 }
 0xb59   :  { %v949_v30 = vpop.permute.xlu1 %948 }
 0xb5a   :  { %953 = vst.msk [vmem:[%s1425_s3 + $0x8] sm:$0xff] %vm34_vm0, %v949_v30  ;;  %957 = vst.msk [vmem:[#allocation2 + $0x8] sm:$0xff] %vm34_vm0, %v949_v30  ;;  %v947_v8 = vpop.permute.xlu0 %946 }
 0xb5b   :  { %952 = vst.msk [vmem:[%s1425_s3] sm:$0xff] %vm34_vm0, %v947_v8  ;;  %956 = vst.msk [vmem:[#allocation2] sm:$0xff] %vm34_vm0, %v947_v8 }
 0xb5d   :  { %v963_v31 = vpop.permute.xlu1 %962 }
 0xb5e   :  { %967 = vst.msk [vmem:[#allocation3 + $0x8] sm:$0xff] %vm34_vm0, %v963_v31  ;;  %v961_v32 = vpop.permute.xlu0 %960 }
 0xb5f   :  { %966 = vst.msk [vmem:[#allocation3] sm:$0xff] %vm34_vm0, %v961_v32 }
 0xb60   :  { %972 = vsyncpa [#allocation5], 1 }

</bundles_post_ra>
